<compile_context>
chip_gen: v6e
topology: v6e:2x2x1
jax: 0.10.0
libtpu: 0.0.40
codegen_flags: <defaults>
</compile_context>

<pallas_src>
import functools

import jax
import jax.numpy as jnp
from jax import lax
from jax.experimental import pallas as pl
from jax.experimental.pallas import tpu as pltpu


def _round_up(n: int, m: int) -> int:
    return (n + m - 1) // m * m


def _ffn_ln_kernel(x_ref, w1_ref, b1_ref, w2_ref, b2_ref, g_ref, beta_ref,
                   o_ref, *, eps: float, h_valid: int):
    # x_ref: (tile_rows, H_pad)   w1: (H_pad, I_pad)  b1: (1, I_pad)
    # w2: (I_pad, H_pad)          b2/gamma/beta: (1, H_pad)
    x = x_ref[...]                       # keep native dtype (f32 or bf16) for the MXU
    h_pad = x.shape[-1]

    # ---- Linear 1 (MXU, f32 accumulation) ----
    h = jnp.dot(x, w1_ref[...], preferred_element_type=jnp.float32)
    h = h + b1_ref[...].astype(jnp.float32)

    # ---- Exact (erf) GELU in f32 (EUP slot; matches torch.nn.GELU default) ----
    h = 0.5 * h * (1.0 + lax.erf(h * 0.7071067811865476))

    # ---- Linear 2 (MXU): cast activations to the weight dtype, accumulate f32 ----
    y = jnp.dot(h.astype(w2_ref.dtype), w2_ref[...],
                preferred_element_type=jnp.float32)
    y = y + b2_ref[...].astype(jnp.float32)

    # ---- Dropout: identity in eval mode ----
    # TODO(synk): training-mode dropout would need pltpu.prng_seed/prng_random_bits.

    # ---- Residual + LayerNorm over the TRUE hidden width (f32 math) ----
    z = y + x.astype(jnp.float32)
    if h_valid == h_pad:
        mean = jnp.mean(z, axis=-1, keepdims=True)
        diff = z - mean
        var = jnp.mean(diff * diff, axis=-1, keepdims=True)
    else:
        # Padded lanes are masked out so mean/var use only the real hidden dims.
        lane = lax.broadcasted_iota(jnp.int32, z.shape, dimension=1)
        mask = (lane < h_valid).astype(jnp.float32)
        inv_h = jnp.float32(1.0 / h_valid)
        z = z * mask
        mean = jnp.sum(z, axis=-1, keepdims=True) * inv_h
        diff = (z - mean) * mask
        var = jnp.sum(diff * diff, axis=-1, keepdims=True) * inv_h

    zn = diff * lax.rsqrt(var + eps)
    o_ref[...] = (zn * g_ref[...].astype(jnp.float32)
                  + beta_ref[...].astype(jnp.float32)).astype(o_ref.dtype)


def _default_vmem_limit_bytes() -> int:
    try:
        cap = int(pltpu.get_tpu_info().vmem_capacity_bytes)
    except Exception:
        cap = 64 * 1024 * 1024   # conservative (v7x physical VMEM per TC)
    # Leave headroom below physical (128 MiB v5e/v6e, 64 MiB v7x).
    return int(cap * 0.85)


def intermediate_forward(x, w1, b1, w2, b2, gamma, beta, *,
                         layer_norm_eps: float,
                         tile_rows: int = 256,
                         vmem_limit_bytes: int | None = None):
    """x: (batch, seq, hidden). Weights may be f32 or bf16 (bf16 -> MXU peak).

    Returns (batch, seq, hidden) in x.dtype.
    """
    B, S, H = x.shape
    I = w1.shape[1]
    rows = B * S

    # Lane-dense padding: last dims multiples of 128 (no-op for BERT-sized H/I).
    H_pad = _round_up(H, 128)
    I_pad = _round_up(I, 128)

    # Large row tiles amortize per-step overhead & feed the MXU; clamp so tiny
    # inputs don't blow up the padded row count, keep multiple-of-8 sublanes.
    tile_rows = max(8, min(tile_rows, _round_up(rows, 8)))
    rows_pad = _round_up(rows, tile_rows)

    x2d = jnp.pad(x.reshape(rows, H), ((0, rows_pad - rows), (0, H_pad - H)))
    w1p = jnp.pad(w1, ((0, H_pad - H), (0, I_pad - I)))
    w2p = jnp.pad(w2, ((0, I_pad - I), (0, H_pad - H)))
    b1p = jnp.pad(b1, (0, I_pad - I)).reshape(1, I_pad)
    b2p = jnp.pad(b2, (0, H_pad - H)).reshape(1, H_pad)
    gp = jnp.pad(gamma, (0, H_pad - H)).reshape(1, H_pad)
    bep = jnp.pad(beta, (0, H_pad - H)).reshape(1, H_pad)

    if vmem_limit_bytes is None:
        vmem_limit_bytes = _default_vmem_limit_bytes()

    kernel = functools.partial(_ffn_ln_kernel, eps=float(layer_norm_eps),
                               h_valid=H)

    def run(buffered_weights: bool):
        def const_spec(shape):
            # Resident operands: constant index_map.  Buffered(1) halves their
            # VMEM footprint (single buffer instead of the default double).
            if buffered_weights:
                return pl.BlockSpec(shape, lambda i: (0, 0),
                                    pipeline_mode=pl.Buffered(1))
            return pl.BlockSpec(shape, lambda i: (0, 0))

        return pl.pallas_call(
            kernel,
            out_shape=jax.ShapeDtypeStruct((rows_pad, H_pad), x.dtype),
            grid_spec=pltpu.PrefetchScalarGridSpec(
                num_scalar_prefetch=0,
                grid=(rows_pad // tile_rows,),
                in_specs=[
                    pl.BlockSpec((tile_rows, H_pad), lambda i: (i, 0)),  # x rows
                    const_spec((H_pad, I_pad)),                          # W1
                    const_spec((1, I_pad)),                              # b1
                    const_spec((I_pad, H_pad)),                          # W2
                    const_spec((1, H_pad)),                              # b2
                    const_spec((1, H_pad)),                              # gamma
                    const_spec((1, H_pad)),                              # beta
                ],
                out_specs=pl.BlockSpec((tile_rows, H_pad), lambda i: (i, 0)),
            ),
            compiler_params=pltpu.CompilerParams(
                dimension_semantics=("parallel",),
                vmem_limit_bytes=vmem_limit_bytes),
        )(x2d, w1p, b1p, w2p, b2p, gp, bep)

    try:
        out2d = run(True)
    except Exception:
        # Fallback if pipeline_mode=pl.Buffered(1) is rejected by this jax build.
        out2d = run(False)

    return out2d[:rows, :H].reshape(B, S, H)


if __name__ == "__main__":
    # Small shapes consistent with the module's forward: (batch, seq, hidden)
    batch, seq, hidden, intermediate = 2, 8, 32, 64
    layer_norm_eps = 1e-12
    hidden_dropout = 0.1   # eval mode -> dropout is identity

    key = jax.random.PRNGKey(0)
    kx, k1, k2, k3, k4 = jax.random.split(key, 5)

    x = jax.random.normal(kx, (batch, seq, hidden), dtype=jnp.float32)

    # Deterministic synthetic parameters (not a checkpoint load)
    w1 = jax.random.normal(k1, (hidden, intermediate), jnp.float32) * 0.02
    b1 = jax.random.normal(k2, (intermediate,), jnp.float32) * 0.02
    w2 = jax.random.normal(k3, (intermediate, hidden), jnp.float32) * 0.02
    b2 = jax.random.normal(k4, (hidden,), jnp.float32) * 0.02
    gamma = jnp.ones((hidden,), jnp.float32)
    beta = jnp.zeros((hidden,), jnp.float32)

    # f32 path (tight correctness check vs pure-JAX reference)
    out = intermediate_forward(x, w1, b1, w2, b2, gamma, beta,
                               layer_norm_eps=layer_norm_eps)
    jax.block_until_ready(out)

    h_ref = jnp.dot(x, w1) + b1
    h_ref = 0.5 * h_ref * (1.0 + lax.erf(h_ref / jnp.sqrt(2.0)))
    y_ref = jnp.dot(h_ref, w2) + b2
    z_ref = y_ref + x
    mu = jnp.mean(z_ref, axis=-1, keepdims=True)
    var = jnp.mean((z_ref - mu) ** 2, axis=-1, keepdims=True)
    ref = (z_ref - mu) * lax.rsqrt(var + layer_norm_eps) * gamma + beta

    assert out.shape == (batch, seq, hidden)
    assert jnp.allclose(out, ref, atol=1e-5, rtol=1e-5)

    # bf16 fast path (same kernel; bf16 MXU operands, f32 accumulation + LN)
    out_bf16 = intermediate_forward(
        x.astype(jnp.bfloat16),
        w1.astype(jnp.bfloat16), b1,
        w2.astype(jnp.bfloat16), b2,
        gamma, beta, layer_norm_eps=layer_norm_eps)
    jax.block_until_ready(out_bf16)
    assert jnp.allclose(out_bf16.astype(jnp.float32), ref, atol=1e-1, rtol=1e-1)

    print("KERNEL_OK")
</pallas_src>

<mosaic_0001>
module attributes {stable_mosaic.version = 11 : i64} {
  func.func @_ffn_ln_kernel(%arg0: i32, %arg1: memref<16x128xf32, #tpu.memory_space<vmem>>, %arg2: memref<128x128xf32, #tpu.memory_space<vmem>>, %arg3: memref<1x128xf32, #tpu.memory_space<vmem>>, %arg4: memref<128x128xf32, #tpu.memory_space<vmem>>, %arg5: memref<1x128xf32, #tpu.memory_space<vmem>>, %arg6: memref<1x128xf32, #tpu.memory_space<vmem>>, %arg7: memref<1x128xf32, #tpu.memory_space<vmem>>, %arg8: memref<16x128xf32, #tpu.memory_space<vmem>>) attributes {dimension_semantics = [#tpu.dimension_semantics<parallel>], iteration_bounds = array<i64: 1>, scalar_prefetch = 0 : i64, scratch_operands = 0 : i64, tpu.core_type = #tpu.core_type<tc>, window_params = [{transform_indices = @transform_0, window_bounds = array<i64: 16, 128>}, {pipeline_mode = #tpu.pipeline_mode<synchronous>, transform_indices = @transform_1, window_bounds = array<i64: 128, 128>}, {pipeline_mode = #tpu.pipeline_mode<synchronous>, transform_indices = @transform_2, window_bounds = array<i64: 1, 128>}, {pipeline_mode = #tpu.pipeline_mode<synchronous>, transform_indices = @transform_3, window_bounds = array<i64: 128, 128>}, {pipeline_mode = #tpu.pipeline_mode<synchronous>, transform_indices = @transform_4, window_bounds = array<i64: 1, 128>}, {pipeline_mode = #tpu.pipeline_mode<synchronous>, transform_indices = @transform_5, window_bounds = array<i64: 1, 128>}, {pipeline_mode = #tpu.pipeline_mode<synchronous>, transform_indices = @transform_6, window_bounds = array<i64: 1, 128>}, {transform_indices = @transform_7, window_bounds = array<i64: 16, 128>}]} {
    %c0 = arith.constant 0 : index
    %c0_0 = arith.constant 0 : index
    %0 = vector.load %arg1[%c0, %c0_0] : memref<16x128xf32, #tpu.memory_space<vmem>>, vector<16x128xf32>
    %c0_1 = arith.constant 0 : index
    %c0_2 = arith.constant 0 : index
    %1 = vector.load %arg2[%c0_1, %c0_2] : memref<128x128xf32, #tpu.memory_space<vmem>>, vector<128x128xf32>
    %cst = arith.constant dense<0.000000e+00> : vector<16x128xf32>
    %2 = tpu.matmul %0, %1, %cst {dimension_numbers = #tpu.dot_dimension_numbers<[1], [0], [0], [1], [0, 0, 1, 1], [], []>} : vector<16x128xf32>, vector<128x128xf32>, vector<16x128xf32> -> vector<16x128xf32>
    %c0_3 = arith.constant 0 : index
    %c0_4 = arith.constant 0 : index
    %3 = vector.load %arg3[%c0_3, %c0_4] : memref<1x128xf32, #tpu.memory_space<vmem>>, vector<1x128xf32>
    %4 = vector.broadcast %3 : vector<1x128xf32> to vector<16x128xf32>
    %5 = arith.addf %2, %4 : vector<16x128xf32>
    %cst_5 = arith.constant 5.000000e-01 : f32
    %6 = vector.broadcast %cst_5 : f32 to vector<16x128xf32>
    %7 = arith.mulf %6, %5 : vector<16x128xf32>
    %cst_6 = arith.constant 0.707106769 : f32
    %8 = vector.broadcast %cst_6 : f32 to vector<16x128xf32>
    %9 = arith.mulf %5, %8 : vector<16x128xf32>
    %10 = math.erf %9 : vector<16x128xf32>
    %cst_7 = arith.constant 1.000000e+00 : f32
    %11 = vector.broadcast %cst_7 : f32 to vector<16x128xf32>
    %12 = arith.addf %11, %10 : vector<16x128xf32>
    %13 = arith.mulf %7, %12 : vector<16x128xf32>
    %c0_8 = arith.constant 0 : index
    %c0_9 = arith.constant 0 : index
    %14 = vector.load %arg4[%c0_8, %c0_9] : memref<128x128xf32, #tpu.memory_space<vmem>>, vector<128x128xf32>
    %cst_10 = arith.constant dense<0.000000e+00> : vector<16x128xf32>
    %15 = tpu.matmul %13, %14, %cst_10 {dimension_numbers = #tpu.dot_dimension_numbers<[1], [0], [0], [1], [0, 0, 1, 1], [], []>} : vector<16x128xf32>, vector<128x128xf32>, vector<16x128xf32> -> vector<16x128xf32>
    %c0_11 = arith.constant 0 : index
    %c0_12 = arith.constant 0 : index
    %16 = vector.load %arg5[%c0_11, %c0_12] : memref<1x128xf32, #tpu.memory_space<vmem>>, vector<1x128xf32>
    %17 = vector.broadcast %16 : vector<1x128xf32> to vector<16x128xf32>
    %18 = arith.addf %15, %17 : vector<16x128xf32>
    %19 = arith.addf %18, %0 : vector<16x128xf32>
    %20 = tpu.iota {dimensions = array<i32: 1>} : vector<16x128xi32>
    %c32_i32 = arith.constant 32 : i32
    %21 = vector.broadcast %c32_i32 : i32 to vector<16x128xi32>
    %22 = arith.cmpi slt, %20, %21 : vector<16x128xi32>
    %23 = arith.extui %22 : vector<16x128xi1> to vector<16x128xi32>
    %24 = arith.sitofp %23 : vector<16x128xi32> to vector<16x128xf32>
    %25 = arith.mulf %19, %24 : vector<16x128xf32>
    %cst_13 = arith.constant dense<0.000000e+00> : vector<16xf32>
    %26 = vector.multi_reduction <add>, %25, %cst_13 [1] : vector<16x128xf32> to vector<16xf32>
    %27 = vector.shape_cast %26 : vector<16xf32> to vector<16x1xf32>
    %cst_14 = arith.constant 3.125000e-02 : f32
    %28 = vector.broadcast %cst_14 : f32 to vector<16x1xf32>
    %29 = arith.mulf %27, %28 : vector<16x1xf32>
    %30 = vector.broadcast %29 : vector<16x1xf32> to vector<16x128xf32>
    %31 = arith.subf %25, %30 : vector<16x128xf32>
    %32 = arith.mulf %31, %24 : vector<16x128xf32>
    %33 = arith.mulf %32, %32 : vector<16x128xf32>
    %cst_15 = arith.constant dense<0.000000e+00> : vector<16xf32>
    %34 = vector.multi_reduction <add>, %33, %cst_15 [1] : vector<16x128xf32> to vector<16xf32>
    %35 = vector.shape_cast %34 : vector<16xf32> to vector<16x1xf32>
    %cst_16 = arith.constant 3.125000e-02 : f32
    %36 = vector.broadcast %cst_16 : f32 to vector<16x1xf32>
    %37 = arith.mulf %35, %36 : vector<16x1xf32>
    %cst_17 = arith.constant 9.99999996E-13 : f32
    %38 = vector.broadcast %cst_17 : f32 to vector<16x1xf32>
    %39 = arith.addf %37, %38 : vector<16x1xf32>
    %40 = math.rsqrt %39 : vector<16x1xf32>
    %41 = vector.broadcast %40 : vector<16x1xf32> to vector<16x128xf32>
    %42 = arith.mulf %32, %41 : vector<16x128xf32>
    %c0_18 = arith.constant 0 : index
    %c0_19 = arith.constant 0 : index
    %43 = vector.load %arg6[%c0_18, %c0_19] : memref<1x128xf32, #tpu.memory_space<vmem>>, vector<1x128xf32>
    %44 = vector.broadcast %43 : vector<1x128xf32> to vector<16x128xf32>
    %45 = arith.mulf %42, %44 : vector<16x128xf32>
    %c0_20 = arith.constant 0 : index
    %c0_21 = arith.constant 0 : index
    %46 = vector.load %arg7[%c0_20, %c0_21] : memref<1x128xf32, #tpu.memory_space<vmem>>, vector<1x128xf32>
    %47 = vector.broadcast %46 : vector<1x128xf32> to vector<16x128xf32>
    %48 = arith.addf %45, %47 : vector<16x128xf32>
    %c0_22 = arith.constant 0 : index
    %c0_23 = arith.constant 0 : index
    %49 = vector.load %arg8[%c0_22, %c0_23] : memref<16x128xf32, #tpu.memory_space<vmem>>, vector<16x128xf32>
    tpu.vector_store %arg8[%c0_22, %c0_23], %48 {strides = array<i32>} : memref<16x128xf32, #tpu.memory_space<vmem>>, vector<16x128xf32>,
    return
  }
  func.func @transform_0(%arg0: i32) -> (i32, i32) {
    %c0_i32 = arith.constant 0 : i32
    %c0_i32_0 = arith.constant 0 : i32
    return %arg0, %c0_i32 : i32, i32
  }
  func.func @transform_1(%arg0: i32) -> (i32, i32) {
    %c0_i32 = arith.constant 0 : i32
    %c0_i32_0 = arith.constant 0 : i32
    %c0_i32_1 = arith.constant 0 : i32
    return %c0_i32, %c0_i32_0 : i32, i32
  }
  func.func @transform_2(%arg0: i32) -> (i32, i32) {
    %c0_i32 = arith.constant 0 : i32
    %c0_i32_0 = arith.constant 0 : i32
    %c0_i32_1 = arith.constant 0 : i32
    return %c0_i32, %c0_i32_0 : i32, i32
  }
  func.func @transform_3(%arg0: i32) -> (i32, i32) {
    %c0_i32 = arith.constant 0 : i32
    %c0_i32_0 = arith.constant 0 : i32
    %c0_i32_1 = arith.constant 0 : i32
    return %c0_i32, %c0_i32_0 : i32, i32
  }
  func.func @transform_4(%arg0: i32) -> (i32, i32) {
    %c0_i32 = arith.constant 0 : i32
    %c0_i32_0 = arith.constant 0 : i32
    %c0_i32_1 = arith.constant 0 : i32
    return %c0_i32, %c0_i32_0 : i32, i32
  }
  func.func @transform_5(%arg0: i32) -> (i32, i32) {
    %c0_i32 = arith.constant 0 : i32
    %c0_i32_0 = arith.constant 0 : i32
    %c0_i32_1 = arith.constant 0 : i32
    return %c0_i32, %c0_i32_0 : i32, i32
  }
  func.func @transform_6(%arg0: i32) -> (i32, i32) {
    %c0_i32 = arith.constant 0 : i32
    %c0_i32_0 = arith.constant 0 : i32
    %c0_i32_1 = arith.constant 0 : i32
    return %c0_i32, %c0_i32_0 : i32, i32
  }
  func.func @transform_7(%arg0: i32) -> (i32, i32) {
    %c0_i32 = arith.constant 0 : i32
    %c0_i32_0 = arith.constant 0 : i32
    return %arg0, %c0_i32 : i32, i32
  }
}

module attributes {stable_mosaic.version = 11 : i64} {
  func.func @_ffn_ln_kernel(%arg0: i32, %arg1: memref<16x128xf32, #tpu.memory_space<vmem>>, %arg2: memref<128x128xf32, #tpu.memory_space<vmem>>, %arg3: memref<1x128xf32, #tpu.memory_space<vmem>>, %arg4: memref<128x128xf32, #tpu.memory_space<vmem>>, %arg5: memref<1x128xf32, #tpu.memory_space<vmem>>, %arg6: memref<1x128xf32, #tpu.memory_space<vmem>>, %arg7: memref<1x128xf32, #tpu.memory_space<vmem>>, %arg8: memref<16x128xf32, #tpu.memory_space<vmem>>) attributes {dimension_semantics = [#tpu.dimension_semantics<parallel>], iteration_bounds = array<i64: 1>, scalar_prefetch = 0 : i64, scratch_operands = 0 : i64, tpu.core_type = #tpu.core_type<tc>, window_params = [{transform_indices = @transform_0, window_bounds = array<i64: 16, 128>}, {pipeline_mode = #tpu.pipeline_mode<synchronous>, transform_indices = @transform_1, window_bounds = array<i64: 128, 128>}, {pipeline_mode = #tpu.pipeline_mode<synchronous>, transform_indices = @transform_2, window_bounds = array<i64: 1, 128>}, {pipeline_mode = #tpu.pipeline_mode<synchronous>, transform_indices = @transform_3, window_bounds = array<i64: 128, 128>}, {pipeline_mode = #tpu.pipeline_mode<synchronous>, transform_indices = @transform_4, window_bounds = array<i64: 1, 128>}, {pipeline_mode = #tpu.pipeline_mode<synchronous>, transform_indices = @transform_5, window_bounds = array<i64: 1, 128>}, {pipeline_mode = #tpu.pipeline_mode<synchronous>, transform_indices = @transform_6, window_bounds = array<i64: 1, 128>}, {transform_indices = @transform_7, window_bounds = array<i64: 16, 128>}]} {
    %c0 = arith.constant 0 : index
    %c0_0 = arith.constant 0 : index
    %0 = vector.load %arg1[%c0, %c0_0] : memref<16x128xf32, #tpu.memory_space<vmem>>, vector<16x128xf32>
    %c0_1 = arith.constant 0 : index
    %c0_2 = arith.constant 0 : index
    %1 = vector.load %arg2[%c0_1, %c0_2] : memref<128x128xf32, #tpu.memory_space<vmem>>, vector<128x128xf32>
    %cst = arith.constant dense<0.000000e+00> : vector<16x128xf32>
    %2 = tpu.matmul %0, %1, %cst {dimension_numbers = #tpu.dot_dimension_numbers<[1], [0], [0], [1], [0, 0, 1, 1], [], []>} : vector<16x128xf32>, vector<128x128xf32>, vector<16x128xf32> -> vector<16x128xf32>
    %c0_3 = arith.constant 0 : index
    %c0_4 = arith.constant 0 : index
    %3 = vector.load %arg3[%c0_3, %c0_4] : memref<1x128xf32, #tpu.memory_space<vmem>>, vector<1x128xf32>
    %4 = vector.broadcast %3 : vector<1x128xf32> to vector<16x128xf32>
    %5 = arith.addf %2, %4 : vector<16x128xf32>
    %cst_5 = arith.constant 5.000000e-01 : f32
    %6 = vector.broadcast %cst_5 : f32 to vector<16x128xf32>
    %7 = arith.mulf %6, %5 : vector<16x128xf32>
    %cst_6 = arith.constant 0.707106769 : f32
    %8 = vector.broadcast %cst_6 : f32 to vector<16x128xf32>
    %9 = arith.mulf %5, %8 : vector<16x128xf32>
    %10 = math.erf %9 : vector<16x128xf32>
    %cst_7 = arith.constant 1.000000e+00 : f32
    %11 = vector.broadcast %cst_7 : f32 to vector<16x128xf32>
    %12 = arith.addf %11, %10 : vector<16x128xf32>
    %13 = arith.mulf %7, %12 : vector<16x128xf32>
    %c0_8 = arith.constant 0 : index
    %c0_9 = arith.constant 0 : index
    %14 = vector.load %arg4[%c0_8, %c0_9] : memref<128x128xf32, #tpu.memory_space<vmem>>, vector<128x128xf32>
    %cst_10 = arith.constant dense<0.000000e+00> : vector<16x128xf32>
    %15 = tpu.matmul %13, %14, %cst_10 {dimension_numbers = #tpu.dot_dimension_numbers<[1], [0], [0], [1], [0, 0, 1, 1], [], []>} : vector<16x128xf32>, vector<128x128xf32>, vector<16x128xf32> -> vector<16x128xf32>
    %c0_11 = arith.constant 0 : index
    %c0_12 = arith.constant 0 : index
    %16 = vector.load %arg5[%c0_11, %c0_12] : memref<1x128xf32, #tpu.memory_space<vmem>>, vector<1x128xf32>
    %17 = vector.broadcast %16 : vector<1x128xf32> to vector<16x128xf32>
    %18 = arith.addf %15, %17 : vector<16x128xf32>
    %19 = arith.addf %18, %0 : vector<16x128xf32>
    %20 = tpu.iota {dimensions = array<i32: 1>} : vector<16x128xi32>
    %c32_i32 = arith.constant 32 : i32
    %21 = vector.broadcast %c32_i32 : i32 to vector<16x128xi32>
    %22 = arith.cmpi slt, %20, %21 : vector<16x128xi32>
    %23 = arith.extui %22 : vector<16x128xi1> to vector<16x128xi32>
    %24 = arith.sitofp %23 : vector<16x128xi32> to vector<16x128xf32>
    %25 = arith.mulf %19, %24 : vector<16x128xf32>
    %cst_13 = arith.constant dense<0.000000e+00> : vector<16xf32>
    %26 = vector.multi_reduction <add>, %25, %cst_13 [1] : vector<16x128xf32> to vector<16xf32>
    %27 = vector.shape_cast %26 : vector<16xf32> to vector<16x1xf32>
    %cst_14 = arith.constant 3.125000e-02 : f32
    %28 = vector.broadcast %cst_14 : f32 to vector<16x1xf32>
    %29 = arith.mulf %27, %28 : vector<16x1xf32>
    %30 = vector.broadcast %29 : vector<16x1xf32> to vector<16x128xf32>
    %31 = arith.subf %25, %30 : vector<16x128xf32>
    %32 = arith.mulf %31, %24 : vector<16x128xf32>
    %33 = arith.mulf %32, %32 : vector<16x128xf32>
    %cst_15 = arith.constant dense<0.000000e+00> : vector<16xf32>
    %34 = vector.multi_reduction <add>, %33, %cst_15 [1] : vector<16x128xf32> to vector<16xf32>
    %35 = vector.shape_cast %34 : vector<16xf32> to vector<16x1xf32>
    %cst_16 = arith.constant 3.125000e-02 : f32
    %36 = vector.broadcast %cst_16 : f32 to vector<16x1xf32>
    %37 = arith.mulf %35, %36 : vector<16x1xf32>
    %cst_17 = arith.constant 9.99999996E-13 : f32
    %38 = vector.broadcast %cst_17 : f32 to vector<16x1xf32>
    %39 = arith.addf %37, %38 : vector<16x1xf32>
    %40 = math.rsqrt %39 : vector<16x1xf32>
    %41 = vector.broadcast %40 : vector<16x1xf32> to vector<16x128xf32>
    %42 = arith.mulf %32, %41 : vector<16x128xf32>
    %c0_18 = arith.constant 0 : index
    %c0_19 = arith.constant 0 : index
    %43 = vector.load %arg6[%c0_18, %c0_19] : memref<1x128xf32, #tpu.memory_space<vmem>>, vector<1x128xf32>
    %44 = vector.broadcast %43 : vector<1x128xf32> to vector<16x128xf32>
    %45 = arith.mulf %42, %44 : vector<16x128xf32>
    %c0_20 = arith.constant 0 : index
    %c0_21 = arith.constant 0 : index
    %46 = vector.load %arg7[%c0_20, %c0_21] : memref<1x128xf32, #tpu.memory_space<vmem>>, vector<1x128xf32>
    %47 = vector.broadcast %46 : vector<1x128xf32> to vector<16x128xf32>
    %48 = arith.addf %45, %47 : vector<16x128xf32>
    %c0_22 = arith.constant 0 : index
    %c0_23 = arith.constant 0 : index
    %49 = vector.load %arg8[%c0_22, %c0_23] : memref<16x128xf32, #tpu.memory_space<vmem>>, vector<16x128xf32>
    tpu.vector_store %arg8[%c0_22, %c0_23], %48 {strides = array<i32>} : memref<16x128xf32, #tpu.memory_space<vmem>>, vector<16x128xf32>,
    return
  }
  func.func @transform_0(%arg0: i32) -> (i32, i32) {
    %c0_i32 = arith.constant 0 : i32
    %c0_i32_0 = arith.constant 0 : i32
    return %arg0, %c0_i32 : i32, i32
  }
  func.func @transform_1(%arg0: i32) -> (i32, i32) {
    %c0_i32 = arith.constant 0 : i32
    %c0_i32_0 = arith.constant 0 : i32
    %c0_i32_1 = arith.constant 0 : i32
    return %c0_i32, %c0_i32_0 : i32, i32
  }
  func.func @transform_2(%arg0: i32) -> (i32, i32) {
    %c0_i32 = arith.constant 0 : i32
    %c0_i32_0 = arith.constant 0 : i32
    %c0_i32_1 = arith.constant 0 : i32
    return %c0_i32, %c0_i32_0 : i32, i32
  }
  func.func @transform_3(%arg0: i32) -> (i32, i32) {
    %c0_i32 = arith.constant 0 : i32
    %c0_i32_0 = arith.constant 0 : i32
    %c0_i32_1 = arith.constant 0 : i32
    return %c0_i32, %c0_i32_0 : i32, i32
  }
  func.func @transform_4(%arg0: i32) -> (i32, i32) {
    %c0_i32 = arith.constant 0 : i32
    %c0_i32_0 = arith.constant 0 : i32
    %c0_i32_1 = arith.constant 0 : i32
    return %c0_i32, %c0_i32_0 : i32, i32
  }
  func.func @transform_5(%arg0: i32) -> (i32, i32) {
    %c0_i32 = arith.constant 0 : i32
    %c0_i32_0 = arith.constant 0 : i32
    %c0_i32_1 = arith.constant 0 : i32
    return %c0_i32, %c0_i32_0 : i32, i32
  }
  func.func @transform_6(%arg0: i32) -> (i32, i32) {
    %c0_i32 = arith.constant 0 : i32
    %c0_i32_0 = arith.constant 0 : i32
    %c0_i32_1 = arith.constant 0 : i32
    return %c0_i32, %c0_i32_0 : i32, i32
  }
  func.func @transform_7(%arg0: i32) -> (i32, i32) {
    %c0_i32 = arith.constant 0 : i32
    %c0_i32_0 = arith.constant 0 : i32
    return %arg0, %c0_i32 : i32, i32
  }
}

</mosaic_0001>

<bundles_post_ra>
// kernel: tpu_custom_call.1
= control target key start
LH: loop header
LB: loop body
LE: loop exit
PB: predicated region body
PF: predicated region fallthrough
CT: control target
= control target key end

     0   :  { %12 = vsyncpa [#allocation3], 0  ;;  %s650_s0 = inlined_call_operand.hbm [shape: f32[16,128], index: 0, kind: input, shape index: {}]   ;;  %s651_s1 = inlined_call_operand.hbm [shape: f32[128,128], index: 1, kind: input, shape index: {}]   ;;  %s652_s2 = inlined_call_operand.vmem [shape: f32[1,128], index: 2, kind: input, shape index: {}]   ;;  %s653_s3 = inlined_call_operand.hbm [shape: f32[128,128], index: 3, kind: input, shape index: {}]   ;;  %s654_s4 = inlined_call_operand.vmem [shape: f32[1,128], index: 4, kind: input, shape index: {}]   ;;  %s655_s5 = inlined_call_operand.vmem [shape: f32[1,128], index: 5, kind: input, shape index: {}]   ;;  %s656_s6 = inlined_call_operand.vmem [shape: f32[1,128], index: 6, kind: input, shape index: {}]   ;;  %s657_s7 = inlined_call_operand.hbm [shape: f32[16,128], index: 7, kind: output, shape index: {}]  }
   0x1   :  { %13 = vsyncpa [#allocation6], 0 }
   0x2   :  { %14 = vsyncpa [#allocation4], 0  ;;  %s559_s24 = smov [#allocation5]   ;;  %s560_s26 = smov [#allocation2]  }
   0x3   :  { %s32_s25 = sshll.u32 %s559_s24, 4  ;;  %s20_s27 = sshll.u32 %s560_s26, 4  ;;  %s33_s25 = int_to_ptr.vmem [resolvable:$true] %s32_s25  ;;  %s21_s27 = int_to_ptr.vmem [resolvable:$true] %s20_s27 }
   0x4   :  { %s481_s28 = scalar_lea.vmem %s33_s25, 2048  ;;  %p486_p1 = scmp.lt.s32.totalorder %s33_s25, %s33_s25 }
   0x5   :  { %p482_p0 = scmp.ne.s32.totalorder %s33_s25, %s481_s28  ;;  %p487_p2 = scmp.lt.s32.totalorder %s481_s28, %s481_s28 }
   0x7   :  { %p488_p3 = por %p487_p2, %p486_p1 }
   0x9   :  { %p489_p4 = pnand %p488_p3, %p482_p0 }
   0xb   :  { %492 = shalt.err (!%p489_p4)
}
   0xc   :  { %s561_s29 = smov 128   ;;  %s562_s30 = smov 8  }
   0xd   :  { %38 = dma.hbm_to_vmem [thread:$0]  %s651_s1, 2048, %s33_s25, [#allocation6], %s561_s29, %s561_s29, %s562_s30  }
   0xe   :  { %s501_s10 = scalar_lea.vmem %s21_s27, 256  ;;  %p506_p6 = scmp.lt.s32.totalorder %s21_s27, %s21_s27 }
   0xf   :  { %p502_p5 = scmp.ne.s32.totalorder %s21_s27, %s501_s10  ;;  %p507_p7 = scmp.lt.s32.totalorder %s501_s10, %s501_s10 }
  0x11   :  { %p508_p8 = por %p507_p7, %p506_p6 }
  0x13   :  { %p509_p9 = pnand %p508_p8, %p502_p5 }
  0x15   :  { %512 = shalt.err (!%p509_p9)
}
  0x16   :  { %26 = dma.hbm_to_vmem [thread:$0]  %s650_s0, 256, %s21_s27, [#allocation3], %s561_s29, %s561_s29, %s562_s30  }
  0x17   :  { %s563_s13 = smov [#allocation7]  }
  0x18   :  { %s46_s14 = sshll.u32 %s563_s13, 4  ;;  %s47_s14 = int_to_ptr.vmem [resolvable:$true] %s46_s14 }
  0x19   :  { %s521_s15 = scalar_lea.vmem %s47_s14, 2048  ;;  %p526_p11 = scmp.lt.s32.totalorder %s47_s14, %s47_s14 }
  0x1a   :  { %p522_p10 = scmp.ne.s32.totalorder %s47_s14, %s521_s15  ;;  %p527_p12 = scmp.lt.s32.totalorder %s521_s15, %s521_s15 }
  0x1c   :  { %p528_p13 = por %p527_p12, %p526_p11 }
  0x1e   :  { %p529_p0 = pnand %p528_p13, %p522_p10 }
  0x20   :  { %532 = shalt.err (!%p529_p0)
}
  0x21   :  { %52 = dma.hbm_to_vmem [thread:$0]  %s653_s3, 2048, %s47_s14, [#allocation6], %s561_s29, %s561_s29, %s562_s30  }
  0x22   :  { %553 = dma.done.wait [#allocation3], 256  }
  0x23   :  { %554 = vsyncadd [#allocation3], 4294967040 }
  0x24   :  { %555 = dma.done.wait [#allocation6], 4096  }
  0x25   :  { %556 = vsyncadd [#allocation6], 4294963200  ;;  %v85_v0 = vld [vmem:[#allocation5 + $0x78] sm:$0xff]  ;;  %v84_v1 = vld [vmem:[#allocation5 + $0x70] sm:$0xff]  ;;  %v278_v49 = vlaneseq  ;;  %v564_v57 = vmov 0.0   ;;  %s565_s21 = smov [#allocation8]  }
  0x26   :  { %388 = vmatprep.subr.mxu0 %v85_v0  ;;  %v83_v2 = vld [vmem:[#allocation5 + $0x68] sm:$0xff]  ;;  %v82_v3 = vld [vmem:[#allocation5 + $0x60] sm:$0xff]  ;;  %v624_v4 = vld [vmem:[#allocation2] sm:$0xff]  ;;  %s334_s22 = sshll.u32 %s565_s21, 4  ;;  %s335_s22 = int_to_ptr.vmem [resolvable:$true] %s334_s22 }
  0x27   :  { %389 = vmatpush3.msra.mxu0 %v85_v0  ;;  %v81_v5 = vld [vmem:[#allocation5 + $0x58] sm:$0xff]  ;;  %420 = vmatprep.mubr.f32.mxu0 %v624_v4  ;;  %v192_v7 = vld [vmem:[#allocation7 + $0x70] sm:$0xff]  ;;  %v191_v9 = vld [vmem:[#allocation7 + $0x68] sm:$0xff]  ;;  %v279_v50 = vand.u32 127, %v278_v49  ;;  %s533_s23 = scalar_lea.vmem %s335_s22, 256  ;;  %p538_p2 = scmp.lt.s32.totalorder %s335_s22, %s335_s22 }
  0x28   :  { %390 = vmatprep.subr.mxu0 %v84_v1  ;;  %v193_v6 = vld [vmem:[#allocation7 + $0x78] sm:$0xff]  ;;  %v80_v8 = vld [vmem:[#allocation5 + $0x50] sm:$0xff]  ;;  %v79_v10 = vld [vmem:[#allocation5 + $0x48] sm:$0xff]  ;;  %p534_p1 = scmp.ne.s32.totalorder %s335_s22, %s533_s23  ;;  %p539_p3 = scmp.lt.s32.totalorder %s533_s23, %s533_s23 }
  0x29   :  { %391 = vmatpush3.msra.mxu0 %v84_v1  ;;  %423 = vmatprep.subr.mxu1 %v193_v6  ;;  %v78_v11 = vld [vmem:[#allocation5 + $0x40] sm:$0xff]  ;;  %v77_v12 = vld [vmem:[#allocation5 + $0x38] sm:$0xff]  ;;  %v76_v13 = vld [vmem:[#allocation5 + $0x30] sm:$0xff]  ;;  %vm280_vm0 = vcmp.lt.s32.totalorder %v279_v50, 32 }
  0x2a   :  { %392 = vmatprep.subr.mxu0 %v83_v2  ;;  %424 = vmatpush3.msra.mxu1 %v193_v6  ;;  %v75_v14 = vld [vmem:[#allocation5 + $0x28] sm:$0xff]  ;;  %v74_v15 = vld [vmem:[#allocation5 + $0x20] sm:$0xff]  ;;  %v73_v16 = vld [vmem:[#allocation5 + $0x18] sm:$0xff]  ;;  %v349_v58 = vsel %vm280_vm0, 1.0, %v564_v57  ;;  %p540_p4 = por %p539_p3, %p538_p2 }
  0x2b   :  { %393 = vmatpush3.msra.mxu0 %v83_v2  ;;  %425 = vmatprep.subr.mxu1 %v192_v7  ;;  %v72_v17 = vld [vmem:[#allocation5 + $0x10] sm:$0xff]  ;;  %v71_v18 = vld [vmem:[#allocation5 + $0x8] sm:$0xff]  ;;  %v70_v19 = vld [vmem:[#allocation5] sm:$0xff] }
  0x2c   :  { %394 = vmatprep.subr.mxu0 %v82_v3  ;;  %426 = vmatpush3.msra.mxu1 %v192_v7  ;;  %v627_v20 = vld [vmem:[#allocation2 + $0x8] sm:$0xff]  ;;  %v190_v21 = vld [vmem:[#allocation7 + $0x60] sm:$0xff]  ;;  %v188_v23 = vld [vmem:[#allocation7 + $0x50] sm:$0xff]  ;;  %p541_p5 = pnand %p540_p4, %p534_p1 }
  0x2d   :  { %395 = vmatpush3.msra.mxu0 %v82_v3  ;;  %427 = vmatprep.subr.mxu1 %v191_v9  ;;  %v189_v22 = vld [vmem:[#allocation7 + $0x58] sm:$0xff]  ;;  %v187_v24 = vld [vmem:[#allocation7 + $0x48] sm:$0xff]  ;;  %v186_v25 = vld [vmem:[#allocation7 + $0x40] sm:$0xff] }
  0x2e   :  { %396 = vmatprep.subr.mxu0 %v81_v5  ;;  %428 = vmatpush3.msra.mxu1 %v191_v9  ;;  %v185_v26 = vld [vmem:[#allocation7 + $0x38] sm:$0xff]  ;;  %v184_v27 = vld [vmem:[#allocation7 + $0x30] sm:$0xff]  ;;  %v183_v28 = vld [vmem:[#allocation7 + $0x28] sm:$0xff] }
  0x2f   :  { %397 = vmatpush3.msra.mxu0 %v81_v5  ;;  %429 = vmatprep.subr.mxu1 %v190_v21  ;;  %v182_v29 = vld [vmem:[#allocation7 + $0x20] sm:$0xff]  ;;  %v181_v30 = vld [vmem:[#allocation7 + $0x18] sm:$0xff]  ;;  %v180_v31 = vld [vmem:[#allocation7 + $0x10] sm:$0xff] }
  0x30   :  { %398 = vmatprep.subr.mxu0 %v80_v8  ;;  %430 = vmatpush3.msra.mxu1 %v190_v21  ;;  %v179_v32 = vld [vmem:[#allocation7 + $0x8] sm:$0xff]  ;;  %v178_v33 = vld [vmem:[#allocation7] sm:$0xff]  ;;  %v347_v34 = vld [vmem:[%s652_s2] ss:$0 sm:$0xff] }
  0x31   :  { %399 = vmatpush3.msra.mxu0 %v80_v8  ;;  %431 = vmatprep.subr.mxu1 %v189_v22  ;;  %v348_v52 = vld [vmem:[%s654_s4] ss:$0 sm:$0xff] }
  0x32   :  { %400 = vmatprep.subr.mxu0 %v79_v10  ;;  %432 = vmatpush3.msra.mxu1 %v189_v22 }
  0x33   :  { %401 = vmatpush3.msra.mxu0 %v79_v10  ;;  %433 = vmatprep.subr.mxu1 %v188_v23 }
  0x34   :  { %402 = vmatprep.subr.mxu0 %v78_v11  ;;  %434 = vmatpush3.msra.mxu1 %v188_v23 }
  0x35   :  { %403 = vmatpush3.msra.mxu0 %v78_v11  ;;  %435 = vmatprep.subr.mxu1 %v187_v24 }
  0x36   :  { %404 = vmatprep.subr.mxu0 %v77_v12  ;;  %436 = vmatpush3.msra.mxu1 %v187_v24 }
  0x37   :  { %405 = vmatpush3.msra.mxu0 %v77_v12  ;;  %437 = vmatprep.subr.mxu1 %v186_v25 }
  0x38   :  { %406 = vmatprep.subr.mxu0 %v76_v13  ;;  %438 = vmatpush3.msra.mxu1 %v186_v25 }
  0x39   :  { %407 = vmatpush3.msra.mxu0 %v76_v13  ;;  %439 = vmatprep.subr.mxu1 %v185_v26 }
  0x3a   :  { %408 = vmatprep.subr.mxu0 %v75_v14  ;;  %440 = vmatpush3.msra.mxu1 %v185_v26 }
  0x3b   :  { %409 = vmatpush3.msra.mxu0 %v75_v14  ;;  %441 = vmatprep.subr.mxu1 %v184_v27 }
  0x3c   :  { %410 = vmatprep.subr.mxu0 %v74_v15  ;;  %442 = vmatpush3.msra.mxu1 %v184_v27 }
  0x3d   :  { %411 = vmatpush3.msra.mxu0 %v74_v15  ;;  %443 = vmatprep.subr.mxu1 %v183_v28  ;;  %v350_v15 = vld [vmem:[%s655_s5] ss:$0 sm:$0xff] }
  0x3e   :  { %412 = vmatprep.subr.mxu0 %v73_v16  ;;  %444 = vmatpush3.msra.mxu1 %v183_v28 }
  0x3f   :  { %413 = vmatpush3.msra.mxu0 %v73_v16  ;;  %445 = vmatprep.subr.mxu1 %v182_v29 }
  0x40   :  { %414 = vmatprep.subr.mxu0 %v72_v17  ;;  %446 = vmatpush3.msra.mxu1 %v182_v29 }
  0x41   :  { %415 = vmatpush3.msra.mxu0 %v72_v17  ;;  %447 = vmatprep.subr.mxu1 %v181_v30  ;;  %v351_v17 = vld [vmem:[%s656_s6] ss:$0 sm:$0xff] }
  0x42   :  { %416 = vmatprep.subr.mxu0 %v71_v18  ;;  %448 = vmatpush3.msra.mxu1 %v181_v30 }
  0x43   :  { %417 = vmatpush3.msra.mxu0 %v71_v18  ;;  %449 = vmatprep.subr.mxu1 %v180_v31 }
  0x44   :  { %418 = vmatprep.subr.mxu0 %v70_v19  ;;  %450 = vmatpush3.msra.mxu1 %v180_v31 }
  0x45   :  { %419 = vmatpush3.msra.mxu0 %v70_v19  ;;  %451 = vmatprep.subr.mxu1 %v179_v32 }
  0x46   :  { %421 = vmatmul.mubr.f32.vlgmr.msra.gmra.mxu0 %v627_v20  ;;  %452 = vmatpush3.msra.mxu1 %v179_v32 }
  0x47   :  { %453 = vmatprep.subr.mxu1 %v178_v33 }
  0x48   :  { %454 = vmatpush3.msra.mxu1 %v178_v33 }
 0x106   :  { %v422_v35 = vpop.f32.mrf.mxu0 }
 0x107   :  { %v165_v36 = vadd.f32 %v422_v35, %v347_v34 }
 0x108   :  { %v159_v37 = vpop.f32.mrf.mxu0 }
 0x109   :  { %v171_v38 = vmul.f32 0.70710677, %v165_v36  ;;  %v160_v39 = vadd.f32 %v347_v34, %v159_v37  ;;  %v169_v46 = vmul.f32 0.5, %v165_v36 }
 0x10b   :  { %465 = verf.f32 %v171_v38  ;;  %v170_v40 = vmul.f32 0.70710677, %v160_v39  ;;  %v168_v44 = vmul.f32 0.5, %v160_v39 }
 0x10d   :  { %467 = verf.f32 %v170_v40 }
 0x118   :  { %v466_v41 = vpop.eup %465 }
 0x119   :  { %v175_v43 = vadd.f32 1.0, %v466_v41 }
 0x11a   :  { %v468_v42 = vpop.eup %467 }
 0x11b   :  { %v174_v45 = vadd.f32 1.0, %v468_v42  ;;  %v177_v48 = vmul.f32 %v175_v43, %v169_v46 }
 0x11d   :  { %v176_v47 = vmul.f32 %v174_v45, %v168_v44 }
 0x11f   :  { %455 = vmatprep.mubr.f32.mxu1 %v176_v47 }
 0x120   :  { %456 = vmatmul.mubr.f32.vlgmr.msra.gmra.mxu1 %v177_v48 }
 0x1e0   :  { %v457_v51 = vpop.f32.mrf.mxu1 }
 0x1e1   :  { %v273_v54 = vadd.f32 %v457_v51, %v348_v52 }
 0x1e2   :  { %v267_v53 = vpop.f32.mrf.mxu1 }
 0x1e3   :  { %v268_v55 = vadd.f32 %v348_v52, %v267_v53  ;;  %v277_v59 = vadd.f32 %v273_v54, %v627_v20 }
 0x1e5   :  { %v276_v56 = vadd.f32 %v268_v55, %v624_v4  ;;  %v284_v61 = vmul.f32 %v349_v58, %v277_v59 }
 0x1e7   :  { %v283_v60 = vmul.f32 %v349_v58, %v276_v56 }
 0x1e9   :  { %285 = vadd.xlane.f32.xlu0 %v283_v60 }
 0x1ed   :  { %287 = vadd.xlane.f32.xlu0 %v284_v61 }
 0x272   :  { %v286_v62 = vpop.xlane.xlu0 %285 }
 0x273   :  { %v289_v63 = vmul.f32 0.03125, %v286_v62 }
 0x275   :  { %v291_v0 = vsub.f32 %v283_v60, %v289_v63 }
 0x276   :  { %v288_v1 = vpop.xlane.xlu0 %287 }
 0x277   :  { %v290_v2 = vmul.f32 0.03125, %v288_v1  ;;  %v293_v3 = vmul.f32 %v349_v58, %v291_v0 }
 0x279   :  { %v292_v5 = vsub.f32 %v284_v61, %v290_v2  ;;  %v295_v6 = vmul.f32 %v293_v3, %v293_v3 }
 0x27b   :  { %297 = vadd.xlane.f32.xlu1 %v295_v6  ;;  %v294_v7 = vmul.f32 %v349_v58, %v292_v5 }
 0x27d   :  { %v296_v8 = vmul.f32 %v294_v7, %v294_v7 }
 0x27f   :  { %299 = vadd.xlane.f32.xlu1 %v296_v8 }
 0x304   :  { %v298_v4 = vpop.xlane.xlu1 %297 }
 0x305   :  { %v301_v9 = vmul.f32 0.03125, %v298_v4 }
 0x307   :  { %v303_v10 = vadd.f32 1e-12, %v301_v9 }
 0x308   :  { %v300_v11 = vpop.xlane.xlu1 %299 }
 0x309   :  { %469 = vrsqrt.f32 %v303_v10  ;;  %v302_v12 = vmul.f32 0.03125, %v300_v11 }
 0x30b   :  { %v304_v13 = vadd.f32 1e-12, %v302_v12 }
 0x30d   :  { %471 = vrsqrt.f32 %v304_v13 }
 0x316   :  { %v470_v14 = vpop.eup %469 }
 0x317   :  { %v307_v16 = vmul.f32 %v470_v14, %v293_v3 }
 0x319   :  { %v316_v18 = vmul.f32 %v350_v15, %v307_v16 }
 0x31a   :  { %v472_v19 = vpop.eup %471 }
 0x31b   :  { %v308_v20 = vmul.f32 %v472_v19, %v294_v7  ;;  %v325_v21 = vadd.f32 %v351_v17, %v316_v18 }
 0x31d   :  { %v317_v22 = vmul.f32 %v350_v15, %v308_v20  ;;  %327 = vst [vmem:[#allocation8] sm:$0xff] %v325_v21 }
 0x31f   :  { %v326_v23 = vadd.f32 %v351_v17, %v317_v22 }
 0x321   :  { %328 = vst [vmem:[#allocation8 + $0x8] sm:$0xff] %v326_v23 }
 0x322   :  { %544 = shalt.err (!%p541_p5)
}
 0x323   :  { %340 = dma.vmem_to_hbm [thread:$0]  %s335_s22, 256, %s657_s7, [#allocation4], %s561_s29, %s561_s29, %s562_s30  }
 0x324   :  { %557 = dma.done.wait [#allocation4], 256  }
 0x325   :  { %558 = vsyncadd [#allocation4], 4294967040 }
 0x326   :  { %344 = vsyncpa [#allocation3], 1 }
 0x327   :  { %345 = vsyncpa [#allocation6], 1 }
 0x328   :  { %346 = vsyncpa [#allocation4], 1 }

// kernel: tpu_custom_call.1
= control target key start
LH: loop header
LB: loop body
LE: loop exit
PB: predicated region body
PF: predicated region fallthrough
CT: control target
= control target key end

     0   :  { %12 = vsyncpa [#allocation3], 0  ;;  %s650_s0 = inlined_call_operand.hbm [shape: f32[16,128], index: 0, kind: input, shape index: {}]   ;;  %s651_s1 = inlined_call_operand.hbm [shape: f32[128,128], index: 1, kind: input, shape index: {}]   ;;  %s652_s2 = inlined_call_operand.vmem [shape: f32[1,128], index: 2, kind: input, shape index: {}]   ;;  %s653_s3 = inlined_call_operand.hbm [shape: f32[128,128], index: 3, kind: input, shape index: {}]   ;;  %s654_s4 = inlined_call_operand.vmem [shape: f32[1,128], index: 4, kind: input, shape index: {}]   ;;  %s655_s5 = inlined_call_operand.vmem [shape: f32[1,128], index: 5, kind: input, shape index: {}]   ;;  %s656_s6 = inlined_call_operand.vmem [shape: f32[1,128], index: 6, kind: input, shape index: {}]   ;;  %s657_s7 = inlined_call_operand.hbm [shape: f32[16,128], index: 7, kind: output, shape index: {}]  }
   0x1   :  { %13 = vsyncpa [#allocation6], 0 }
   0x2   :  { %14 = vsyncpa [#allocation4], 0  ;;  %s559_s24 = smov [#allocation5]   ;;  %s560_s26 = smov [#allocation2]  }
   0x3   :  { %s32_s25 = sshll.u32 %s559_s24, 4  ;;  %s20_s27 = sshll.u32 %s560_s26, 4  ;;  %s33_s25 = int_to_ptr.vmem [resolvable:$true] %s32_s25  ;;  %s21_s27 = int_to_ptr.vmem [resolvable:$true] %s20_s27 }
   0x4   :  { %s481_s28 = scalar_lea.vmem %s33_s25, 2048  ;;  %p486_p1 = scmp.lt.s32.totalorder %s33_s25, %s33_s25 }
   0x5   :  { %p482_p0 = scmp.ne.s32.totalorder %s33_s25, %s481_s28  ;;  %p487_p2 = scmp.lt.s32.totalorder %s481_s28, %s481_s28 }
   0x7   :  { %p488_p3 = por %p487_p2, %p486_p1 }
   0x9   :  { %p489_p4 = pnand %p488_p3, %p482_p0 }
   0xb   :  { %492 = shalt.err (!%p489_p4)
}
   0xc   :  { %s561_s29 = smov 128   ;;  %s562_s30 = smov 8  }
   0xd   :  { %38 = dma.hbm_to_vmem [thread:$0]  %s651_s1, 2048, %s33_s25, [#allocation6], %s561_s29, %s561_s29, %s562_s30  }
   0xe   :  { %s501_s10 = scalar_lea.vmem %s21_s27, 256  ;;  %p506_p6 = scmp.lt.s32.totalorder %s21_s27, %s21_s27 }
   0xf   :  { %p502_p5 = scmp.ne.s32.totalorder %s21_s27, %s501_s10  ;;  %p507_p7 = scmp.lt.s32.totalorder %s501_s10, %s501_s10 }
  0x11   :  { %p508_p8 = por %p507_p7, %p506_p6 }
  0x13   :  { %p509_p9 = pnand %p508_p8, %p502_p5 }
  0x15   :  { %512 = shalt.err (!%p509_p9)
}
  0x16   :  { %26 = dma.hbm_to_vmem [thread:$0]  %s650_s0, 256, %s21_s27, [#allocation3], %s561_s29, %s561_s29, %s562_s30  }
  0x17   :  { %s563_s13 = smov [#allocation7]  }
  0x18   :  { %s46_s14 = sshll.u32 %s563_s13, 4  ;;  %s47_s14 = int_to_ptr.vmem [resolvable:$true] %s46_s14 }
  0x19   :  { %s521_s15 = scalar_lea.vmem %s47_s14, 2048  ;;  %p526_p11 = scmp.lt.s32.totalorder %s47_s14, %s47_s14 }
  0x1a   :  { %p522_p10 = scmp.ne.s32.totalorder %s47_s14, %s521_s15  ;;  %p527_p12 = scmp.lt.s32.totalorder %s521_s15, %s521_s15 }
  0x1c   :  { %p528_p13 = por %p527_p12, %p526_p11 }
  0x1e   :  { %p529_p0 = pnand %p528_p13, %p522_p10 }
  0x20   :  { %532 = shalt.err (!%p529_p0)
}
  0x21   :  { %52 = dma.hbm_to_vmem [thread:$0]  %s653_s3, 2048, %s47_s14, [#allocation6], %s561_s29, %s561_s29, %s562_s30  }
  0x22   :  { %553 = dma.done.wait [#allocation3], 256  }
  0x23   :  { %554 = vsyncadd [#allocation3], 4294967040 }
  0x24   :  { %555 = dma.done.wait [#allocation6], 4096  }
  0x25   :  { %556 = vsyncadd [#allocation6], 4294963200  ;;  %v85_v0 = vld [vmem:[#allocation5 + $0x78] sm:$0xff]  ;;  %v84_v1 = vld [vmem:[#allocation5 + $0x70] sm:$0xff]  ;;  %v278_v49 = vlaneseq  ;;  %v564_v57 = vmov 0.0   ;;  %s565_s21 = smov [#allocation8]  }
  0x26   :  { %388 = vmatprep.subr.mxu0 %v85_v0  ;;  %v83_v2 = vld [vmem:[#allocation5 + $0x68] sm:$0xff]  ;;  %v82_v3 = vld [vmem:[#allocation5 + $0x60] sm:$0xff]  ;;  %v624_v4 = vld [vmem:[#allocation2] sm:$0xff]  ;;  %s334_s22 = sshll.u32 %s565_s21, 4  ;;  %s335_s22 = int_to_ptr.vmem [resolvable:$true] %s334_s22 }
  0x27   :  { %389 = vmatpush3.msra.mxu0 %v85_v0  ;;  %v81_v5 = vld [vmem:[#allocation5 + $0x58] sm:$0xff]  ;;  %420 = vmatprep.mubr.f32.mxu0 %v624_v4  ;;  %v192_v7 = vld [vmem:[#allocation7 + $0x70] sm:$0xff]  ;;  %v191_v9 = vld [vmem:[#allocation7 + $0x68] sm:$0xff]  ;;  %v279_v50 = vand.u32 127, %v278_v49  ;;  %s533_s23 = scalar_lea.vmem %s335_s22, 256  ;;  %p538_p2 = scmp.lt.s32.totalorder %s335_s22, %s335_s22 }
  0x28   :  { %390 = vmatprep.subr.mxu0 %v84_v1  ;;  %v193_v6 = vld [vmem:[#allocation7 + $0x78] sm:$0xff]  ;;  %v80_v8 = vld [vmem:[#allocation5 + $0x50] sm:$0xff]  ;;  %v79_v10 = vld [vmem:[#allocation5 + $0x48] sm:$0xff]  ;;  %p534_p1 = scmp.ne.s32.totalorder %s335_s22, %s533_s23  ;;  %p539_p3 = scmp.lt.s32.totalorder %s533_s23, %s533_s23 }
  0x29   :  { %391 = vmatpush3.msra.mxu0 %v84_v1  ;;  %423 = vmatprep.subr.mxu1 %v193_v6  ;;  %v78_v11 = vld [vmem:[#allocation5 + $0x40] sm:$0xff]  ;;  %v77_v12 = vld [vmem:[#allocation5 + $0x38] sm:$0xff]  ;;  %v76_v13 = vld [vmem:[#allocation5 + $0x30] sm:$0xff]  ;;  %vm280_vm0 = vcmp.lt.s32.totalorder %v279_v50, 32 }
  0x2a   :  { %392 = vmatprep.subr.mxu0 %v83_v2  ;;  %424 = vmatpush3.msra.mxu1 %v193_v6  ;;  %v75_v14 = vld [vmem:[#allocation5 + $0x28] sm:$0xff]  ;;  %v74_v15 = vld [vmem:[#allocation5 + $0x20] sm:$0xff]  ;;  %v73_v16 = vld [vmem:[#allocation5 + $0x18] sm:$0xff]  ;;  %v349_v58 = vsel %vm280_vm0, 1.0, %v564_v57  ;;  %p540_p4 = por %p539_p3, %p538_p2 }
  0x2b   :  { %393 = vmatpush3.msra.mxu0 %v83_v2  ;;  %425 = vmatprep.subr.mxu1 %v192_v7  ;;  %v72_v17 = vld [vmem:[#allocation5 + $0x10] sm:$0xff]  ;;  %v71_v18 = vld [vmem:[#allocation5 + $0x8] sm:$0xff]  ;;  %v70_v19 = vld [vmem:[#allocation5] sm:$0xff] }
  0x2c   :  { %394 = vmatprep.subr.mxu0 %v82_v3  ;;  %426 = vmatpush3.msra.mxu1 %v192_v7  ;;  %v627_v20 = vld [vmem:[#allocation2 + $0x8] sm:$0xff]  ;;  %v190_v21 = vld [vmem:[#allocation7 + $0x60] sm:$0xff]  ;;  %v188_v23 = vld [vmem:[#allocation7 + $0x50] sm:$0xff]  ;;  %p541_p5 = pnand %p540_p4, %p534_p1 }
  0x2d   :  { %395 = vmatpush3.msra.mxu0 %v82_v3  ;;  %427 = vmatprep.subr.mxu1 %v191_v9  ;;  %v189_v22 = vld [vmem:[#allocation7 + $0x58] sm:$0xff]  ;;  %v187_v24 = vld [vmem:[#allocation7 + $0x48] sm:$0xff]  ;;  %v186_v25 = vld [vmem:[#allocation7 + $0x40] sm:$0xff] }
  0x2e   :  { %396 = vmatprep.subr.mxu0 %v81_v5  ;;  %428 = vmatpush3.msra.mxu1 %v191_v9  ;;  %v185_v26 = vld [vmem:[#allocation7 + $0x38] sm:$0xff]  ;;  %v184_v27 = vld [vmem:[#allocation7 + $0x30] sm:$0xff]  ;;  %v183_v28 = vld [vmem:[#allocation7 + $0x28] sm:$0xff] }
  0x2f   :  { %397 = vmatpush3.msra.mxu0 %v81_v5  ;;  %429 = vmatprep.subr.mxu1 %v190_v21  ;;  %v182_v29 = vld [vmem:[#allocation7 + $0x20] sm:$0xff]  ;;  %v181_v30 = vld [vmem:[#allocation7 + $0x18] sm:$0xff]  ;;  %v180_v31 = vld [vmem:[#allocation7 + $0x10] sm:$0xff] }
  0x30   :  { %398 = vmatprep.subr.mxu0 %v80_v8  ;;  %430 = vmatpush3.msra.mxu1 %v190_v21  ;;  %v179_v32 = vld [vmem:[#allocation7 + $0x8] sm:$0xff]  ;;  %v178_v33 = vld [vmem:[#allocation7] sm:$0xff]  ;;  %v347_v34 = vld [vmem:[%s652_s2] ss:$0 sm:$0xff] }
  0x31   :  { %399 = vmatpush3.msra.mxu0 %v80_v8  ;;  %431 = vmatprep.subr.mxu1 %v189_v22  ;;  %v348_v52 = vld [vmem:[%s654_s4] ss:$0 sm:$0xff] }
  0x32   :  { %400 = vmatprep.subr.mxu0 %v79_v10  ;;  %432 = vmatpush3.msra.mxu1 %v189_v22 }
  0x33   :  { %401 = vmatpush3.msra.mxu0 %v79_v10  ;;  %433 = vmatprep.subr.mxu1 %v188_v23 }
  0x34   :  { %402 = vmatprep.subr.mxu0 %v78_v11  ;;  %434 = vmatpush3.msra.mxu1 %v188_v23 }
  0x35   :  { %403 = vmatpush3.msra.mxu0 %v78_v11  ;;  %435 = vmatprep.subr.mxu1 %v187_v24 }
  0x36   :  { %404 = vmatprep.subr.mxu0 %v77_v12  ;;  %436 = vmatpush3.msra.mxu1 %v187_v24 }
  0x37   :  { %405 = vmatpush3.msra.mxu0 %v77_v12  ;;  %437 = vmatprep.subr.mxu1 %v186_v25 }
  0x38   :  { %406 = vmatprep.subr.mxu0 %v76_v13  ;;  %438 = vmatpush3.msra.mxu1 %v186_v25 }
  0x39   :  { %407 = vmatpush3.msra.mxu0 %v76_v13  ;;  %439 = vmatprep.subr.mxu1 %v185_v26 }
  0x3a   :  { %408 = vmatprep.subr.mxu0 %v75_v14  ;;  %440 = vmatpush3.msra.mxu1 %v185_v26 }
  0x3b   :  { %409 = vmatpush3.msra.mxu0 %v75_v14  ;;  %441 = vmatprep.subr.mxu1 %v184_v27 }
  0x3c   :  { %410 = vmatprep.subr.mxu0 %v74_v15  ;;  %442 = vmatpush3.msra.mxu1 %v184_v27 }
  0x3d   :  { %411 = vmatpush3.msra.mxu0 %v74_v15  ;;  %443 = vmatprep.subr.mxu1 %v183_v28  ;;  %v350_v15 = vld [vmem:[%s655_s5] ss:$0 sm:$0xff] }
  0x3e   :  { %412 = vmatprep.subr.mxu0 %v73_v16  ;;  %444 = vmatpush3.msra.mxu1 %v183_v28 }
  0x3f   :  { %413 = vmatpush3.msra.mxu0 %v73_v16  ;;  %445 = vmatprep.subr.mxu1 %v182_v29 }
  0x40   :  { %414 = vmatprep.subr.mxu0 %v72_v17  ;;  %446 = vmatpush3.msra.mxu1 %v182_v29 }
  0x41   :  { %415 = vmatpush3.msra.mxu0 %v72_v17  ;;  %447 = vmatprep.subr.mxu1 %v181_v30  ;;  %v351_v17 = vld [vmem:[%s656_s6] ss:$0 sm:$0xff] }
  0x42   :  { %416 = vmatprep.subr.mxu0 %v71_v18  ;;  %448 = vmatpush3.msra.mxu1 %v181_v30 }
  0x43   :  { %417 = vmatpush3.msra.mxu0 %v71_v18  ;;  %449 = vmatprep.subr.mxu1 %v180_v31 }
  0x44   :  { %418 = vmatprep.subr.mxu0 %v70_v19  ;;  %450 = vmatpush3.msra.mxu1 %v180_v31 }
  0x45   :  { %419 = vmatpush3.msra.mxu0 %v70_v19  ;;  %451 = vmatprep.subr.mxu1 %v179_v32 }
  0x46   :  { %421 = vmatmul.mubr.f32.vlgmr.msra.gmra.mxu0 %v627_v20  ;;  %452 = vmatpush3.msra.mxu1 %v179_v32 }
  0x47   :  { %453 = vmatprep.subr.mxu1 %v178_v33 }
  0x48   :  { %454 = vmatpush3.msra.mxu1 %v178_v33 }
 0x106   :  { %v422_v35 = vpop.f32.mrf.mxu0 }
 0x107   :  { %v165_v36 = vadd.f32 %v422_v35, %v347_v34 }
 0x108   :  { %v159_v37 = vpop.f32.mrf.mxu0 }
 0x109   :  { %v171_v38 = vmul.f32 0.70710677, %v165_v36  ;;  %v160_v39 = vadd.f32 %v347_v34, %v159_v37  ;;  %v169_v46 = vmul.f32 0.5, %v165_v36 }
 0x10b   :  { %465 = verf.f32 %v171_v38  ;;  %v170_v40 = vmul.f32 0.70710677, %v160_v39  ;;  %v168_v44 = vmul.f32 0.5, %v160_v39 }
 0x10d   :  { %467 = verf.f32 %v170_v40 }
 0x118   :  { %v466_v41 = vpop.eup %465 }
 0x119   :  { %v175_v43 = vadd.f32 1.0, %v466_v41 }
 0x11a   :  { %v468_v42 = vpop.eup %467 }
 0x11b   :  { %v174_v45 = vadd.f32 1.0, %v468_v42  ;;  %v177_v48 = vmul.f32 %v175_v43, %v169_v46 }
 0x11d   :  { %v176_v47 = vmul.f32 %v174_v45, %v168_v44 }
 0x11f   :  { %455 = vmatprep.mubr.f32.mxu1 %v176_v47 }
 0x120   :  { %456 = vmatmul.mubr.f32.vlgmr.msra.gmra.mxu1 %v177_v48 }
 0x1e0   :  { %v457_v51 = vpop.f32.mrf.mxu1 }
 0x1e1   :  { %v273_v54 = vadd.f32 %v457_v51, %v348_v52 }
 0x1e2   :  { %v267_v53 = vpop.f32.mrf.mxu1 }
 0x1e3   :  { %v268_v55 = vadd.f32 %v348_v52, %v267_v53  ;;  %v277_v59 = vadd.f32 %v273_v54, %v627_v20 }
 0x1e5   :  { %v276_v56 = vadd.f32 %v268_v55, %v624_v4  ;;  %v284_v61 = vmul.f32 %v349_v58, %v277_v59 }
 0x1e7   :  { %v283_v60 = vmul.f32 %v349_v58, %v276_v56 }
 0x1e9   :  { %285 = vadd.xlane.f32.xlu0 %v283_v60 }
 0x1ed   :  { %287 = vadd.xlane.f32.xlu0 %v284_v61 }
 0x272   :  { %v286_v62 = vpop.xlane.xlu0 %285 }
 0x273   :  { %v289_v63 = vmul.f32 0.03125, %v286_v62 }
 0x275   :  { %v291_v0 = vsub.f32 %v283_v60, %v289_v63 }
 0x276   :  { %v288_v1 = vpop.xlane.xlu0 %287 }
 0x277   :  { %v290_v2 = vmul.f32 0.03125, %v288_v1  ;;  %v293_v3 = vmul.f32 %v349_v58, %v291_v0 }
 0x279   :  { %v292_v5 = vsub.f32 %v284_v61, %v290_v2  ;;  %v295_v6 = vmul.f32 %v293_v3, %v293_v3 }
 0x27b   :  { %297 = vadd.xlane.f32.xlu1 %v295_v6  ;;  %v294_v7 = vmul.f32 %v349_v58, %v292_v5 }
 0x27d   :  { %v296_v8 = vmul.f32 %v294_v7, %v294_v7 }
 0x27f   :  { %299 = vadd.xlane.f32.xlu1 %v296_v8 }
 0x304   :  { %v298_v4 = vpop.xlane.xlu1 %297 }
 0x305   :  { %v301_v9 = vmul.f32 0.03125, %v298_v4 }
 0x307   :  { %v303_v10 = vadd.f32 1e-12, %v301_v9 }
 0x308   :  { %v300_v11 = vpop.xlane.xlu1 %299 }
 0x309   :  { %469 = vrsqrt.f32 %v303_v10  ;;  %v302_v12 = vmul.f32 0.03125, %v300_v11 }
 0x30b   :  { %v304_v13 = vadd.f32 1e-12, %v302_v12 }
 0x30d   :  { %471 = vrsqrt.f32 %v304_v13 }
 0x316   :  { %v470_v14 = vpop.eup %469 }
 0x317   :  { %v307_v16 = vmul.f32 %v470_v14, %v293_v3 }
 0x319   :  { %v316_v18 = vmul.f32 %v350_v15, %v307_v16 }
 0x31a   :  { %v472_v19 = vpop.eup %471 }
 0x31b   :  { %v308_v20 = vmul.f32 %v472_v19, %v294_v7  ;;  %v325_v21 = vadd.f32 %v351_v17, %v316_v18 }
 0x31d   :  { %v317_v22 = vmul.f32 %v350_v15, %v308_v20  ;;  %327 = vst [vmem:[#allocation8] sm:$0xff] %v325_v21 }
 0x31f   :  { %v326_v23 = vadd.f32 %v351_v17, %v317_v22 }
 0x321   :  { %328 = vst [vmem:[#allocation8 + $0x8] sm:$0xff] %v326_v23 }
 0x322   :  { %544 = shalt.err (!%p541_p5)
}
 0x323   :  { %340 = dma.vmem_to_hbm [thread:$0]  %s335_s22, 256, %s657_s7, [#allocation4], %s561_s29, %s561_s29, %s562_s30  }
 0x324   :  { %557 = dma.done.wait [#allocation4], 256  }
 0x325   :  { %558 = vsyncadd [#allocation4], 4294967040 }
 0x326   :  { %344 = vsyncpa [#allocation3], 1 }
 0x327   :  { %345 = vsyncpa [#allocation6], 1 }
 0x328   :  { %346 = vsyncpa [#allocation4], 1 }

</bundles_post_ra>
